<compile_context>
chip_gen: v7x
topology: tpu7x:2x2x1
jax: 0.10.0
libtpu: 0.0.40
codegen_flags: <defaults>
</compile_context>

<pallas_src>
import functools

import jax
import jax.numpy as jnp
from jax.experimental import pallas as pl
from jax.experimental.pallas import tpu as pltpu

_VMEM_LIMIT = 48 * 1024 * 1024  # leaves headroom inside v7x's 64 MiB physical VMEM


def _round_up(x, m):
    return ((x + m - 1) // m) * m


# ---------------------------------------------------------------------------
# Kernel 1: per-edge TransE score  (gamma - ||h + r - t||_2)
# ---------------------------------------------------------------------------
def _edge_score_kernel(h_ref, r_ref, t_ref, o_ref, *, gamma):
    d = h_ref[...] + r_ref[...] - t_ref[...]           # (TE, D)  VPU
    sq = jnp.sum(d * d, axis=-1, keepdims=True)        # (TE, 1)
    # NOTE: (TE, 1) output => masked vst, accepted knowingly: this kernel is
    # input-DMA-bound (output bytes are ~3*D x smaller than the input traffic).
    o_ref[...] = gamma - jnp.sqrt(sq)


def transe_edge_score(head, rel, tail, gamma, te_target=8192):
    """head, rel, tail: (E, D) fp32 -> (E,) fp32 scores."""
    E, D = head.shape
    te_target = max(8, (te_target // 8) * 8)
    if E <= 8:
        te = E
    else:
        # Use >= 2 blocks whenever possible (both v7x TensorCores get work) and big
        # multi-MiB tiles so per-step overhead (~0.35us) amortizes against DMA.
        te = min(te_target, _round_up(pl.cdiv(E, 2), 8))
    n_blocks = pl.cdiv(E, te)
    # No jnp.pad: the grid is cdiv(E, te); the last (partial) block may read garbage
    # rows past E, but those rows only feed output rows that Pallas clips on writeback,
    # so they never reach the (E, 1) result.
    out = pl.pallas_call(
        functools.partial(_edge_score_kernel, gamma=gamma),
        out_shape=jax.ShapeDtypeStruct((E, 1), jnp.float32),
        grid=(n_blocks,),
        in_specs=[
            pl.BlockSpec((te, D), lambda i: (i, 0)),
            pl.BlockSpec((te, D), lambda i: (i, 0)),
            pl.BlockSpec((te, D), lambda i: (i, 0)),
        ],
        out_specs=pl.BlockSpec((te, 1), lambda i: (i, 0)),
        compiler_params=pltpu.CompilerParams(
            dimension_semantics=("parallel",),
            vmem_limit_bytes=_VMEM_LIMIT),
    )(head, rel, tail)
    return out[:, 0]


# ---------------------------------------------------------------------------
# Kernel 2: negative-sampling score (both neg_head branches of create_neg)
# ---------------------------------------------------------------------------
def _neg_l2_kernel(x_ref, r_ref, bT_ref, o_ref, bsq_ref, *, gamma, subtract_rel,
                   mxu_dtype):
    bT = bT_ref[...]                                   # (D, TN), VMEM-resident over i

    # |b|^2 as a lane-oriented (1, TN) row.  Hoisted: b (and hence |b|^2) only changes
    # when the j block changes, so compute it once at i == 0 and reuse across the
    # whole inner TM loop via VMEM scratch.
    @pl.when(pl.program_id(2) == 0)
    def _():
        bsq_ref[...] = jax.lax.dot_general(
            jnp.ones((1, bT.shape[0]), jnp.float32), bT * bT,
            dimension_numbers=(((1,), (0,)), ((), ())),
            preferred_element_type=jnp.float32)        # (1, TN), f32

    # Fused 'a' operand: heads + relations (neg_head=False) or tails - relations.
    if subtract_rel:
        a = x_ref[...] - r_ref[...]                    # (TM, D)
    else:
        a = x_ref[...] + r_ref[...]
    a_sq = jnp.sum(a * a, axis=-1, keepdims=True)      # (TM, 1), f32
    # Fold the -2 into the small (TM, D) operand instead of scaling the (TM, TN)
    # matmul result (D=32 is ~64x fewer VALU ops than TN=2048).
    a2 = (a * (-2.0)).astype(mxu_dtype)
    # Plain (TM, D) x (D, TN) MXU matmul: b was pre-transposed once in the wrapper, so
    # there is no hidden per-tile XLU transpose of the resident b tile.
    ab2 = jax.lax.dot_general(
        a2, bT.astype(mxu_dtype),
        dimension_numbers=(((1,), (0,)), ((), ())),
        preferred_element_type=jnp.float32)            # (TM, TN)
    sq = bsq_ref[...] + ab2 + a_sq                     # = |a|^2 + |b|^2 - 2 a.b
    o_ref[...] = gamma - jnp.sqrt(jnp.maximum(sq, 1e-30))


def _neg_vmem_bytes(tm, tn, d):
    """Conservative double-buffered VMEM footprint (lane/sublane padded)."""
    d_lane = _round_up(d, 128)
    d_sub = _round_up(d, 8)
    tn_lane = _round_up(tn, 128)
    out_tile = tm * tn_lane * 4
    a_tiles = 2 * tm * d_lane * 4          # x and r
    b_tile = d_sub * tn_lane * 4
    bsq = 8 * tn_lane * 4                  # scratch, single copy
    return 2 * (out_tile + a_tiles + b_tile) + bsq


def transe_neg_score(heads, relations, tails, num_chunks, chunk_size,
                     neg_sample_size, gamma, neg_head=False,
                     tm_target=512, tn_target=2048, mxu_dtype=jnp.float32):
    """DGL-KE create_neg(neg_head) forward.

    neg_head=False: heads/relations: (num_chunks*chunk_size, D), tails: (num_chunks*neg, D)
    neg_head=True : tails/relations: (num_chunks*chunk_size, D), heads: (num_chunks*neg, D)
    Returns (num_chunks, chunk_size, neg_sample_size) fp32 scores.

    tm_target=512 fits every generation's VMEM (incl. v7x 64 MiB per TC); on v5e/v6e
    (128 MiB VMEM) tm_target=1024 halves per-step overhead.  mxu_dtype=jnp.bfloat16 is
    a v7x lever (the kernel is compute-bound there); note the expanded |a|^2+|b|^2-2ab
    form can lose precision for scores near gamma in bf16 -- validate tolerance.
    """
    D = heads.shape[1]
    if neg_head:
        x = tails.reshape(num_chunks, chunk_size, D)
        r = relations.reshape(num_chunks, chunk_size, D)
        b = heads.reshape(num_chunks, neg_sample_size, D)
    else:
        x = heads.reshape(num_chunks, chunk_size, D)
        r = relations.reshape(num_chunks, chunk_size, D)
        b = tails.reshape(num_chunks, neg_sample_size, D)
    # One-time HBM transpose (layout plumbing): the kernel consumes (D, TN) tiles so
    # the contraction is transpose-free on-chip; b traffic is << the output traffic.
    bT = jnp.transpose(b, (0, 2, 1))                   # (num_chunks, D, neg_sample_size)

    # Lane axis (tn): the FULL neg_sample_size whenever it fits (<= tn_target), else a
    # large multiple of 128 so output rows stay multi-KiB contiguous on writeback.
    if neg_sample_size <= tn_target:
        tn = neg_sample_size
    else:
        tn = max(128, (tn_target // 128) * 128)
    # Sublane axis (tm): the full chunk_size if it fits, otherwise a multiple of 8.
    if chunk_size <= tm_target:
        tm = chunk_size
    else:
        tm = max(8, (tm_target // 8) * 8)
    # VMEM guard (matters on v7x's 64 MiB per-TC VMEM): shrink tiles instead of ever
    # falling back to a full-dim block that might not fit / degrade the schedule.
    while _neg_vmem_bytes(tm, tn, D) > _VMEM_LIMIT and tn > 128:
        tn = max(128, ((tn // 2) // 128) * 128)
    while _neg_vmem_bytes(tm, tn, D) > _VMEM_LIMIT and tm > 8:
        tm = max(8, ((tm // 2) // 8) * 8)

    # cdiv grid: partial edge tiles read garbage past the array bounds, but those rows /
    # columns only feed output elements that are clipped on writeback.
    grid = (num_chunks, pl.cdiv(neg_sample_size, tn), pl.cdiv(chunk_size, tm))

    # NOTE on D: zero-padding D to 128 upstream does NOT recover MXU efficiency (the
    # padded K lanes are processed either way) and would add HBM read traffic; the real
    # levers for the compute-bound (v7x) regime are mxu_dtype=bfloat16 and a larger
    # true D (e.g. production D=400 -> 512 padded lanes is already efficient).
    return pl.pallas_call(
        functools.partial(_neg_l2_kernel, gamma=gamma, subtract_rel=neg_head,
                          mxu_dtype=mxu_dtype),
        out_shape=jax.ShapeDtypeStruct(
            (num_chunks, chunk_size, neg_sample_size), jnp.float32),
        grid=grid,
        in_specs=[
            # 'a'-side tiles stream along the innermost (TM) grid axis ...
            pl.BlockSpec((None, tm, D), lambda c, j, i: (c, i, 0)),
            pl.BlockSpec((None, tm, D), lambda c, j, i: (c, i, 0)),
            # ... while the (D, TN) b tile is fetched once per (chunk, TN) and stays
            # VMEM-resident across the inner TM loop (block index constant in i).
            pl.BlockSpec((None, D, tn), lambda c, j, i: (c, 0, j)),
        ],
        out_specs=pl.BlockSpec((None, tm, tn), lambda c, j, i: (c, i, j)),
        scratch_shapes=[pltpu.VMEM((1, tn), jnp.float32)],   # hoisted |b|^2 row
        compiler_params=pltpu.CompilerParams(
            # The innermost axis carries the hoisted b_sq scratch across i, so it must
            # stay sequential ("arbitrary"); chunk / TN axes shard across megacore TCs.
            dimension_semantics=("parallel", "parallel", "arbitrary"),
            vmem_limit_bytes=_VMEM_LIMIT),
    )(x, r, bT)


# ---------------------------------------------------------------------------
# Pure-JAX references (correctness check)
# ---------------------------------------------------------------------------
def _edge_score_ref(head, rel, tail, gamma):
    return gamma - jnp.linalg.norm(head + rel - tail, axis=-1)


def _neg_score_ref(heads, relations, tails, num_chunks, chunk_size,
                   neg_sample_size, gamma, neg_head=False):
    D = heads.shape[1]
    if neg_head:
        a = (tails - relations).reshape(num_chunks, chunk_size, D)
        b = heads.reshape(num_chunks, neg_sample_size, D)
    else:
        a = (heads + relations).reshape(num_chunks, chunk_size, D)
        b = tails.reshape(num_chunks, neg_sample_size, D)
    a_sq = jnp.sum(a * a, axis=-1)
    b_sq = jnp.sum(b * b, axis=-1)
    sq = (b_sq[:, None, :] - 2.0 * jnp.einsum("bcd,bnd->bcn", a, b)
          + a_sq[:, :, None])
    return gamma - jnp.sqrt(jnp.maximum(sq, 1e-30))


# TODO(synk): dist_func='l1' (cdist p=1) negative path not implemented; default 'l2' only.
# TODO(synk): DGL graph plumbing (g.apply_edges, prepare/save/load) and infer()'s
#             all-pairs broadcast have no Pallas equivalent here; per-edge embedding
#             gathering is assumed to happen outside the kernel.

if __name__ == "__main__":
    gamma = 12.0
    D = 32
    key = jax.random.PRNGKey(0)
    keys = jax.random.split(key, 16)

    # ---- per-edge scores: single block --------------------------------------
    E = 8
    head = jax.random.normal(keys[0], (E, D), dtype=jnp.float32)
    rel = jax.random.normal(keys[1], (E, D), dtype=jnp.float32)
    tail = jax.random.normal(keys[2], (E, D), dtype=jnp.float32)
    s = jax.block_until_ready(transe_edge_score(head, rel, tail, gamma))
    assert s.shape == (E,)
    assert jnp.allclose(s, _edge_score_ref(head, rel, tail, gamma), atol=1e-5, rtol=1e-5)

    # ---- per-edge scores: multi-block grid, partial (clipped) last tile ------
    E2 = 20
    head2 = jax.random.normal(keys[3], (E2, D), dtype=jnp.float32)
    rel2 = jax.random.normal(keys[4], (E2, D), dtype=jnp.float32)
    tail2 = jax.random.normal(keys[5], (E2, D), dtype=jnp.float32)
    s2 = jax.block_until_ready(transe_edge_score(head2, rel2, tail2, gamma))
    assert s2.shape == (E2,)
    assert jnp.allclose(s2, _edge_score_ref(head2, rel2, tail2, gamma),
                        atol=1e-5, rtol=1e-5)
    # explicit tiny tile -> 3 blocks, last one partial
    s3 = jax.block_until_ready(
        transe_edge_score(head2, rel2, tail2, gamma, te_target=8))
    assert jnp.allclose(s3, _edge_score_ref(head2, rel2, tail2, gamma),
                        atol=1e-5, rtol=1e-5)

    # ---- negative sampling, neg_head=False, single block per chunk ----------
    nc, cs, nss = 2, 4, 8
    heads_n = jax.random.normal(keys[6], (nc * cs, D), dtype=jnp.float32)
    rels_n = jax.random.normal(keys[7], (nc * cs, D), dtype=jnp.float32)
    tails_n = jax.random.normal(keys[8], (nc * nss, D), dtype=jnp.float32)
    ns = jax.block_until_ready(
        transe_neg_score(heads_n, rels_n, tails_n, nc, cs, nss, gamma, neg_head=False))
    ns_ref = _neg_score_ref(heads_n, rels_n, tails_n, nc, cs, nss, gamma, neg_head=False)
    assert ns.shape == (nc, cs, nss)
    assert jnp.allclose(ns, ns_ref, atol=1e-4, rtol=1e-4)

    # ---- negative sampling, neg_head=False, ragged tiled grid ----------------
    # cs=20 with tm=16 and nss=384 with tn=256 -> partial blocks on both tiled axes,
    # and the hoisted b_sq scratch is reused across the inner TM loop.
    nc2, cs2, nss2 = 2, 20, 384
    heads_t = jax.random.normal(keys[9], (nc2 * cs2, D), dtype=jnp.float32)
    rels_t = jax.random.normal(keys[10], (nc2 * cs2, D), dtype=jnp.float32)
    tails_t = jax.random.normal(keys[11], (nc2 * nss2, D), dtype=jnp.float32)
    ns_t = jax.block_until_ready(
        transe_neg_score(heads_t, rels_t, tails_t, nc2, cs2, nss2, gamma,
                         neg_head=False, tm_target=16, tn_target=256))
    ns_t_ref = _neg_score_ref(heads_t, rels_t, tails_t, nc2, cs2, nss2, gamma,
                              neg_head=False)
    assert ns_t.shape == (nc2, cs2, nss2)
    assert jnp.allclose(ns_t, ns_t_ref, atol=1e-4, rtol=1e-4)

    # ---- negative sampling, neg_head=True ------------------------------------
    nc3, cs3, nss3 = 2, 4, 8
    heads_h = jax.random.normal(keys[12], (nc3 * nss3, D), dtype=jnp.float32)
    rels_h = jax.random.normal(keys[13], (nc3 * cs3, D), dtype=jnp.float32)
    tails_h = jax.random.normal(keys[14], (nc3 * cs3, D), dtype=jnp.float32)
    ns_h = jax.block_until_ready(
        transe_neg_score(heads_h, rels_h, tails_h, nc3, cs3, nss3, gamma, neg_head=True))
    ns_h_ref = _neg_score_ref(heads_h, rels_h, tails_h, nc3, cs3, nss3, gamma,
                              neg_head=True)
    assert ns_h.shape == (nc3, cs3, nss3)
    assert jnp.allclose(ns_h, ns_h_ref, atol=1e-4, rtol=1e-4)

    print("KERNEL_OK")
</pallas_src>

<mosaic_0001>
module attributes {stable_mosaic.version = 11 : i64} {
  func.func @_edge_score_kernel(%arg0: i32, %arg1: memref<8x32xf32, #tpu.memory_space<vmem>>, %arg2: memref<8x32xf32, #tpu.memory_space<vmem>>, %arg3: memref<8x32xf32, #tpu.memory_space<vmem>>, %arg4: memref<8x1xf32, #tpu.memory_space<vmem>>) attributes {dimension_semantics = [#tpu.dimension_semantics<parallel>], iteration_bounds = array<i64: 1>, scalar_prefetch = 0 : i64, scratch_operands = 0 : i64, tpu.core_type = #tpu.core_type<tc>, window_params = [{transform_indices = @transform_0, window_bounds = array<i64: 8, 32>}, {transform_indices = @transform_1, window_bounds = array<i64: 8, 32>}, {transform_indices = @transform_2, window_bounds = array<i64: 8, 32>}, {transform_indices = @transform_3, window_bounds = array<i64: 8, 1>}]} {
    %c0 = arith.constant 0 : index
    %c0_0 = arith.constant 0 : index
    %0 = vector.load %arg1[%c0, %c0_0] : memref<8x32xf32, #tpu.memory_space<vmem>>, vector<8x32xf32>
    %c0_1 = arith.constant 0 : index
    %c0_2 = arith.constant 0 : index
    %1 = vector.load %arg2[%c0_1, %c0_2] : memref<8x32xf32, #tpu.memory_space<vmem>>, vector<8x32xf32>
    %2 = arith.addf %0, %1 : vector<8x32xf32>
    %c0_3 = arith.constant 0 : index
    %c0_4 = arith.constant 0 : index
    %3 = vector.load %arg3[%c0_3, %c0_4] : memref<8x32xf32, #tpu.memory_space<vmem>>, vector<8x32xf32>
    %4 = arith.subf %2, %3 : vector<8x32xf32>
    %5 = arith.mulf %4, %4 : vector<8x32xf32>
    %cst = arith.constant dense<0.000000e+00> : vector<8xf32>
    %6 = vector.multi_reduction <add>, %5, %cst [1] : vector<8x32xf32> to vector<8xf32>
    %7 = vector.shape_cast %6 : vector<8xf32> to vector<8x1xf32>
    %8 = math.sqrt %7 : vector<8x1xf32>
    %cst_5 = arith.constant 1.200000e+01 : f32
    %9 = vector.broadcast %cst_5 : f32 to vector<8x1xf32>
    %10 = arith.subf %9, %8 : vector<8x1xf32>
    %c0_6 = arith.constant 0 : index
    %c0_7 = arith.constant 0 : index
    %11 = vector.load %arg4[%c0_6, %c0_7] : memref<8x1xf32, #tpu.memory_space<vmem>>, vector<8x1xf32>
    tpu.vector_store %arg4[%c0_6, %c0_7], %10 {strides = array<i32>} : memref<8x1xf32, #tpu.memory_space<vmem>>, vector<8x1xf32>,
    return
  }
  func.func @transform_0(%arg0: i32) -> (i32, i32) {
    %c0_i32 = arith.constant 0 : i32
    %c0_i32_0 = arith.constant 0 : i32
    return %arg0, %c0_i32 : i32, i32
  }
  func.func @transform_1(%arg0: i32) -> (i32, i32) {
    %c0_i32 = arith.constant 0 : i32
    %c0_i32_0 = arith.constant 0 : i32
    return %arg0, %c0_i32 : i32, i32
  }
  func.func @transform_2(%arg0: i32) -> (i32, i32) {
    %c0_i32 = arith.constant 0 : i32
    %c0_i32_0 = arith.constant 0 : i32
    return %arg0, %c0_i32 : i32, i32
  }
  func.func @transform_3(%arg0: i32) -> (i32, i32) {
    %c0_i32 = arith.constant 0 : i32
    %c0_i32_0 = arith.constant 0 : i32
    return %arg0, %c0_i32 : i32, i32
  }
}

</mosaic_0001>

<bundles_post_ra>
// kernel: tpu_custom_call.1
= control target key start
LH: loop header
LB: loop body
LE: loop exit
PB: predicated region body
PF: predicated region fallthrough
CT: control target
= control target key end

     0   :  { %8 = vsyncpa [#allocation3], 0  ;;  %s212_s0 = inlined_call_operand.hbm [shape: f32[8,32], index: 0, kind: input, shape index: {}]   ;;  %s213_s1 = inlined_call_operand.hbm [shape: f32[8,32], index: 1, kind: input, shape index: {}]   ;;  %s214_s2 = inlined_call_operand.hbm [shape: f32[8,32], index: 2, kind: input, shape index: {}]   ;;  %s215_s3 = inlined_call_operand.vmem [shape: f32[8,1], index: 3, kind: output, shape index: {}]  }
   0x1   :  { %9 = vsyncpa [#allocation5], 0  ;;  %s150_s12 = smov [#allocation4]   ;;  %s151_s14 = smov [#allocation2]  }
   0x2   :  { %s26_s13 = sshll.u32 %s150_s12, 4  ;;  %s16_s15 = sshll.u32 %s151_s14, 4  ;;  %s27_s13 = int_to_ptr.vmem [resolvable:$true] %s26_s13  ;;  %s17_s15 = int_to_ptr.vmem [resolvable:$true] %s16_s15 }
   0x3   :  { %s80_s18 = scalar_lea.hbm %s213_s1, 128 }
   0x4   :  { %p81_p0 = scmp.ne.s32.totalorder %s213_s1, %s80_s18  ;;  %p84_p1 = scmp.lt.u32.totalorder %s80_s18, %s213_s1 }
   0x6   :  { %p86_p2 = pnand %p84_p1, %p81_p0 }
   0x8   :  { %89 = shalt.err (!%p86_p2)
}
   0x9   :  { %s90_s23 = scalar_lea.vmem %s27_s13, 128  ;;  %p95_p4 = scmp.lt.s32.totalorder %s27_s13, %s27_s13 }
   0xa   :  { %p91_p3 = scmp.ne.s32.totalorder %s27_s13, %s90_s23  ;;  %p96_p5 = scmp.lt.s32.totalorder %s90_s23, %s90_s23 }
   0xc   :  { %p97_p6 = por %p96_p5, %p95_p4 }
   0xe   :  { %p98_p7 = pnand %p97_p6, %p91_p3 }
  0x10   :  { %101 = shalt.err (!%p98_p7)
}
  0x11   :  { %29 = dma.hbm_to_vmem [thread:$0]  %s213_s1, 128, %s27_s13, [#allocation5]  }
  0x12   :  { %s102_s28 = scalar_lea.hbm %s212_s0, 128 }
  0x13   :  { %p103_p8 = scmp.ne.s32.totalorder %s212_s0, %s102_s28  ;;  %p106_p9 = scmp.lt.u32.totalorder %s102_s28, %s212_s0 }
  0x15   :  { %p108_p10 = pnand %p106_p9, %p103_p8 }
  0x17   :  { %111 = shalt.err (!%p108_p10)
}
  0x18   :  { %s112_s6 = scalar_lea.vmem %s17_s15, 128  ;;  %p117_p12 = scmp.lt.s32.totalorder %s17_s15, %s17_s15 }
  0x19   :  { %p113_p11 = scmp.ne.s32.totalorder %s17_s15, %s112_s6  ;;  %p118_p13 = scmp.lt.s32.totalorder %s112_s6, %s112_s6 }
  0x1b   :  { %p119_p0 = por %p118_p13, %p117_p12 }
  0x1d   :  { %p120_p1 = pnand %p119_p0, %p113_p11 }
  0x1f   :  { %123 = shalt.err (!%p120_p1)
}
  0x20   :  { %19 = dma.hbm_to_vmem [thread:$0]  %s212_s0, 128, %s17_s15, [#allocation3]  }
  0x21   :  { %s152_s8 = smov [#allocation6]   ;;  %s124_s12 = scalar_lea.hbm %s214_s2, 128 }
  0x22   :  { %s36_s9 = sshll.u32 %s152_s8, 4  ;;  %p125_p2 = scmp.ne.s32.totalorder %s214_s2, %s124_s12  ;;  %s37_s9 = int_to_ptr.vmem [resolvable:$true] %s36_s9 }
  0x23   :  { %p128_p3 = scmp.lt.u32.totalorder %s124_s12, %s214_s2 }
  0x25   :  { %p130_p4 = pnand %p128_p3, %p125_p2 }
  0x27   :  { %133 = shalt.err (!%p130_p4)
}
  0x28   :  { %s134_s18 = scalar_lea.vmem %s37_s9, 128  ;;  %p139_p6 = scmp.lt.s32.totalorder %s37_s9, %s37_s9 }
  0x29   :  { %p135_p5 = scmp.ne.s32.totalorder %s37_s9, %s134_s18  ;;  %p140_p7 = scmp.lt.s32.totalorder %s134_s18, %s134_s18 }
  0x2b   :  { %p141_p8 = por %p140_p7, %p139_p6 }
  0x2d   :  { %p142_p9 = pnand %p141_p8, %p135_p5 }
  0x2f   :  { %145 = shalt.err (!%p142_p9)
}
  0x30   :  { %39 = dma.hbm_to_vmem [thread:$0]  %s214_s2, 128, %s37_s9, [#allocation5]  }
  0x31   :  { %146 = dma.done.wait [#allocation3], 128  }
  0x32   :  { %147 = vsyncadd [#allocation3], 4294967168 }
  0x33   :  { %148 = dma.done.wait [#allocation5], 256  }
  0x34   :  { %149 = vsyncadd [#allocation5], 4294967040  ;;  %v49_v0 = vld [vmem:[#allocation2] sm:$0xff]  ;;  %v50_v1 = vld [vmem:[#allocation4] sm:$0xff]  ;;  %vm55_vm0 = vcmask 261120   ;;  %vm67_vm3 = vcmask 7168  }
  0x35   :  { %v52_v2 = vld [vmem:[#allocation6] sm:$0xff]  ;;  %v51_v3 = vadd.f32 %v50_v1, %v49_v0 }
  0x37   :  { %v53_v4 = vsub.f32 %v51_v3, %v52_v2 }
  0x39   :  { %v54_v5 = vmul.f32 %v53_v4, %v53_v4 }
  0x3b   :  { %v56_v6 = vsel %vm55_vm0, %v54_v5, 0.0 }
  0x3c   :  { %57 = vadd.xlane.f32.xlu0 %v56_v6 }
  0xc9   :  { %v58_v7 = vpop.xlane.xlu0 %57 }
  0xca   :  { %78 = vrsqrt.f32 %v58_v7  ;;  %vm61_vm1 = vcmp.eq.f32.partialorder %v58_v7, inf  ;;  %v64_v10 = vand.u32 2147483648, %v58_v7  ;;  %vm63_vm2 = vcmp.eq.f32.partialorder %v58_v7, 0.0 }
  0xd4   :  { %v79_v8 = vpop.eup %78 }
  0xd5   :  { %v60_v9 = vmul.f32 %v79_v8, %v58_v7 }
  0xd7   :  { %v62_v11 = vsel %vm61_vm1, %v58_v7, %v60_v9 }
  0xd8   :  { %v65_v12 = vsel %vm63_vm2, %v64_v10, %v62_v11 }
  0xd9   :  { %v66_v13 = vsub.f32 12.0, %v65_v12 }
  0xdb   :  { %68 = vst.msk [vmem:[%s215_s3] sm:$0xff] %vm67_vm3, %v66_v13 }
  0xdc   :  { %73 = vsyncpa [#allocation3], 1 }
  0xdd   :  { %74 = vsyncpa [#allocation5], 1 }

</bundles_post_ra>
